<compile_context>
chip_gen: v6e
topology: v6e:2x2x1
jax: 0.10.0
libtpu: 0.0.40
codegen_flags: <defaults>
</compile_context>

<pallas_src>
import jax
import jax.numpy as jnp
from jax import lax
from jax.experimental import pallas as pl
from jax.experimental.pallas import tpu as pltpu


def _round_up(x: int, mult: int) -> int:
    return ((x + mult - 1) // mult) * mult


def _sqdist_kernel(lhs_ref, rhs_ref, out_ref):
    # lhs_ref: (tile_n, K)  augmented lhs tile
    # rhs_ref: (K, tile_m)  augmented rhs tile
    # out_ref: (tile_n, tile_m)
    dist = lax.dot_general(
        lhs_ref[...],
        rhs_ref[...],
        dimension_numbers=(((1,), (0,)), ((), ())),
        preferred_element_type=jnp.float32,
    )
    out_ref[...] = jnp.maximum(dist, 0.0).astype(out_ref.dtype)


def _sqdist_kernel_acc(lhs_ref, rhs_ref, out_ref, acc_ref):
    # Same as above, but with a K-reduction grid axis (axis 2) and an f32 accumulator.
    k = pl.program_id(2)

    @pl.when(k == 0)
    def _():
        acc_ref[...] = jnp.zeros_like(acc_ref)

    acc_ref[...] += lax.dot_general(
        lhs_ref[...],
        rhs_ref[...],
        dimension_numbers=(((1,), (0,)), ((), ())),
        preferred_element_type=jnp.float32,
    )

    @pl.when(k == pl.num_programs(2) - 1)
    def _():
        out_ref[...] = jnp.maximum(acc_ref[...], 0.0).astype(out_ref.dtype)


def squared_euclidean_distance(
    lhs: jax.Array, rhs: jax.Array, *, tile_n: int | None = None, tile_m: int | None = None
) -> jax.Array:
    """Pairwise squared euclidean distance, out[i, j] = ||lhs[i] - rhs[j]||^2."""
    assert lhs.shape[1:] == rhs.shape[1:], "lhs/rhs point dims must match"
    N, D = lhs.shape
    M, _ = rhs.shape
    K = D + 2  # augmented contraction dim

    # Output dtype follows the promoted (floating) input dtype, like the torch module.
    out_dtype = jnp.promote_types(lhs.dtype, rhs.dtype)
    if not jnp.issubdtype(out_dtype, jnp.floating):
        out_dtype = jnp.dtype(jnp.float32)
    # MXU feed dtype: keep bf16 inputs in bf16 (native MXU rate, halves HBM/VMEM bytes);
    # accumulation is always f32 via preferred_element_type.
    feed_dtype = (
        jnp.dtype(jnp.bfloat16) if out_dtype == jnp.dtype(jnp.bfloat16) else jnp.dtype(jnp.float32)
    )

    # Norms computed once, in f32, in the wrapper.
    lhs_f = lhs.astype(jnp.float32)
    rhs_f = rhs.astype(jnp.float32)
    lhs_sq = jnp.sum(lhs_f * lhs_f, axis=1, keepdims=True)          # (N, 1)
    rhs_sq = jnp.sum(rhs_f * rhs_f, axis=1, keepdims=True)          # (M, 1)

    # Augmented operands: dist = lhs_aug @ rhs_aug (epilogue folded into the MXU).
    lhs_aug = jnp.concatenate(
        [lhs_f, lhs_sq, jnp.ones((N, 1), jnp.float32)], axis=1
    ).astype(feed_dtype)                                            # (N, K)
    rhs_aug = jnp.concatenate(
        [-2.0 * rhs_f.T, jnp.ones((1, M), jnp.float32), rhs_sq.T], axis=0
    ).astype(feed_dtype)                                            # (K, M)

    # ---- Tile sizing (bounded, VMEM-aware; lane-dense output) -------------------------
    n_aligned = _round_up(N, 8)
    m_aligned = _round_up(M, 128)

    if tile_m is None:
        tile_m = min(512, m_aligned)
    tile_m = min(_round_up(tile_m, 128), m_aligned)
    if tile_n is None:
        # Larger lhs tiles when M is small, to amortize per-grid-step overhead.
        tile_n = 1024 if tile_m <= 128 else (512 if tile_m <= 256 else 256)
    tile_n = min(_round_up(tile_n, 8), n_aligned)

    n_pad = _round_up(N, tile_n)
    m_pad = _round_up(M, tile_m)

    # Only tile the (augmented) reduction dim when it is large enough to threaten VMEM.
    if K > 1024:
        tile_k = 512
        k_pad = _round_up(K, tile_k)
    else:
        tile_k = K
        k_pad = K

    # Pad only when needed (padded rows/cols are zero -> contribute nothing).
    if (n_pad, k_pad) != lhs_aug.shape:
        lhs_aug = jnp.pad(lhs_aug, ((0, n_pad - N), (0, k_pad - K)))
    if (k_pad, m_pad) != rhs_aug.shape:
        rhs_aug = jnp.pad(rhs_aug, ((0, k_pad - K), (0, m_pad - M)))

    grid_n = n_pad // tile_n
    grid_m = m_pad // tile_m
    grid_k = k_pad // tile_k

    # Explicit VMEM budget (double-buffered in/out + f32 accumulator), safe on v5e/v6e/v7x.
    in_itemsize = jnp.dtype(feed_dtype).itemsize
    out_itemsize = jnp.dtype(out_dtype).itemsize
    est_vmem = (
        2 * tile_n * tile_k * in_itemsize
        + 2 * tile_k * tile_m * in_itemsize
        + 2 * tile_n * tile_m * out_itemsize
        + tile_n * tile_m * 4
    )
    vmem_limit = int(min(max(2 * est_vmem, 16 * 1024 * 1024), 32 * 1024 * 1024))

    if grid_k == 1:
        kernel_fn = _sqdist_kernel
        grid = (grid_n, grid_m)
        in_specs = [
            pl.BlockSpec((tile_n, tile_k), lambda i, j: (i, 0)),
            pl.BlockSpec((tile_k, tile_m), lambda i, j: (0, j)),
        ]
        out_specs = pl.BlockSpec((tile_n, tile_m), lambda i, j: (i, j))
        scratch_shapes = []
        dim_sems = ("parallel", "parallel")
    else:
        kernel_fn = _sqdist_kernel_acc
        grid = (grid_n, grid_m, grid_k)
        in_specs = [
            pl.BlockSpec((tile_n, tile_k), lambda i, j, k: (i, k)),
            pl.BlockSpec((tile_k, tile_m), lambda i, j, k: (k, j)),
        ]
        out_specs = pl.BlockSpec((tile_n, tile_m), lambda i, j, k: (i, j))
        scratch_shapes = [pltpu.VMEM((tile_n, tile_m), jnp.float32)]
        dim_sems = ("parallel", "parallel", "arbitrary")

    out = pl.pallas_call(
        kernel_fn,
        out_shape=jax.ShapeDtypeStruct((n_pad, m_pad), out_dtype),
        grid_spec=pltpu.PrefetchScalarGridSpec(
            num_scalar_prefetch=0,
            grid=grid,
            in_specs=in_specs,
            out_specs=out_specs,
            scratch_shapes=scratch_shapes,
        ),
        compiler_params=pltpu.CompilerParams(
            dimension_semantics=dim_sems,
            vmem_limit_bytes=vmem_limit,
        ),
    )(lhs_aug, rhs_aug)

    if (n_pad, m_pad) != (N, M):
        out = out[:N, :M]
    return out


if __name__ == "__main__":
    key = jax.random.PRNGKey(0)
    k1, k2, k3, k4 = jax.random.split(key, 4)

    # Case 1: tiny YOLO-anchor-clustering shapes (points are (w, h) pairs).
    N, M, D = 16, 8, 2
    lhs = jax.random.uniform(k1, (N, D), dtype=jnp.float32)
    rhs = jax.random.uniform(k2, (M, D), dtype=jnp.float32)
    out = jax.block_until_ready(squared_euclidean_distance(lhs, rhs))
    ref = jnp.sum((lhs[:, None, :] - rhs[None, :, :]) ** 2, axis=-1)
    assert out.shape == (N, M)
    assert jnp.allclose(out, ref, atol=1e-3, rtol=1e-3), "mismatch vs reference (small D)"

    # Case 2: large feature dim to exercise the K-tiled (reduction grid axis) path.
    N2, M2, D2 = 64, 32, 1200
    lhs2 = jax.random.uniform(k3, (N2, D2), dtype=jnp.float32)
    rhs2 = jax.random.uniform(k4, (M2, D2), dtype=jnp.float32)
    out2 = jax.block_until_ready(squared_euclidean_distance(lhs2, rhs2))
    ref2 = jnp.sum((lhs2[:, None, :] - rhs2[None, :, :]) ** 2, axis=-1)
    assert out2.shape == (N2, M2)
    assert jnp.allclose(out2, ref2, atol=1e-2, rtol=1e-3), "mismatch vs reference (large D)"

    print("KERNEL_OK")
</pallas_src>

<mosaic_0001>
module attributes {stable_mosaic.version = 11 : i64} {
  func.func @_sqdist_kernel(%arg0: i32, %arg1: i32, %arg2: memref<16x4xf32, #tpu.memory_space<vmem>>, %arg3: memref<4x128xf32, #tpu.memory_space<vmem>>, %arg4: memref<16x128xf32, #tpu.memory_space<vmem>>) attributes {dimension_semantics = [#tpu.dimension_semantics<parallel>, #tpu.dimension_semantics<parallel>], iteration_bounds = array<i64: 1, 1>, scalar_prefetch = 0 : i64, scratch_operands = 0 : i64, tpu.core_type = #tpu.core_type<tc>, window_params = [{transform_indices = @transform_0, window_bounds = array<i64: 16, 4>}, {transform_indices = @transform_1, window_bounds = array<i64: 4, 128>}, {transform_indices = @transform_2, window_bounds = array<i64: 16, 128>}]} {
    %c0 = arith.constant 0 : index
    %c0_0 = arith.constant 0 : index
    %0 = vector.load %arg2[%c0, %c0_0] : memref<16x4xf32, #tpu.memory_space<vmem>>, vector<16x4xf32>
    %c0_1 = arith.constant 0 : index
    %c0_2 = arith.constant 0 : index
    %1 = vector.load %arg3[%c0_1, %c0_2] : memref<4x128xf32, #tpu.memory_space<vmem>>, vector<4x128xf32>
    %cst = arith.constant dense<0.000000e+00> : vector<16x128xf32>
    %2 = tpu.matmul %0, %1, %cst {dimension_numbers = #tpu.dot_dimension_numbers<[1], [0], [0], [1], [0, 0, 1, 1], [], []>} : vector<16x4xf32>, vector<4x128xf32>, vector<16x128xf32> -> vector<16x128xf32>
    %cst_3 = arith.constant 0.000000e+00 : f32
    %3 = vector.broadcast %cst_3 : f32 to vector<16x128xf32>
    %4 = arith.maximumf %2, %3 : vector<16x128xf32>
    %c0_4 = arith.constant 0 : index
    %c0_5 = arith.constant 0 : index
    %5 = vector.load %arg4[%c0_4, %c0_5] : memref<16x128xf32, #tpu.memory_space<vmem>>, vector<16x128xf32>
    tpu.vector_store %arg4[%c0_4, %c0_5], %4 {strides = array<i32>} : memref<16x128xf32, #tpu.memory_space<vmem>>, vector<16x128xf32>,
    return
  }
  func.func @transform_0(%arg0: i32, %arg1: i32) -> (i32, i32) {
    %c0_i32 = arith.constant 0 : i32
    %c0_i32_0 = arith.constant 0 : i32
    return %arg0, %c0_i32 : i32, i32
  }
  func.func @transform_1(%arg0: i32, %arg1: i32) -> (i32, i32) {
    %c0_i32 = arith.constant 0 : i32
    %c0_i32_0 = arith.constant 0 : i32
    return %c0_i32, %arg1 : i32, i32
  }
  func.func @transform_2(%arg0: i32, %arg1: i32) -> (i32, i32) {
    %c0_i32 = arith.constant 0 : i32
    return %arg0, %arg1 : i32, i32
  }
}

</mosaic_0001>

<bundles_post_ra>
// kernel: tpu_custom_call.1
= control target key start
LH: loop header
LB: loop body
LE: loop exit
PB: predicated region body
PF: predicated region fallthrough
CT: control target
= control target key end

     0   :  { %vm22_vm0 = vcmask 1043456   ;;  %vm15_vm1 = vcmask 31744   ;;  %s187_s0 = inlined_call_operand.vmem [shape: f32[16,4], index: 0, kind: input, shape index: {}]   ;;  %s188_s1 = inlined_call_operand.vmem [shape: f32[4,128], index: 1, kind: input, shape index: {}]   ;;  %s189_s2 = inlined_call_operand.hbm [shape: f32[16,128], index: 2, kind: output, shape index: {}]  }
   0x1   :  { %v14_v0 = vld [vmem:[%s188_s1] sm:$0xf]  ;;  %v13_v2 = vld [vmem:[%s187_s0 + $0x8] sm:$0xff] }
   0x2   :  { %v12_v1 = vld [vmem:[%s187_s0] sm:$0xff]  ;;  %127 = vmatprep.subr.msk.mxu0 %vm22_vm0, %v14_v0 }
   0x3   :  { %129 = vmatprep.mubr.msk.f32.mxu0 %vm15_vm1, %v12_v1 }
   0x4   :  { %7 = vsyncpa [#allocation3], 0  ;;  %128 = vmatpush3.msk.msra.mxu0 %vm22_vm0, %v14_v0  ;;  %s157_s15 = smov [#allocation2]  }
   0x5   :  { %130 = vmatmul.mubr.msk.f32.vlgmr.msra.gmra.mxu0 %vm15_vm1, %v13_v2  ;;  %s110_s16 = sshll.u32 %s157_s15, 4  ;;  %s111_s16 = int_to_ptr.vmem [resolvable:$true] %s110_s16 }
   0x6   :  { %s135_s1 = scalar_lea.vmem %s111_s16, 256  ;;  %p140_p1 = scmp.lt.s32.totalorder %s111_s16, %s111_s16 }
   0x7   :  { %p136_p0 = scmp.ne.s32.totalorder %s111_s16, %s135_s1  ;;  %p141_p2 = scmp.lt.s32.totalorder %s135_s1, %s135_s1 }
   0x9   :  { %p142_p3 = por %p141_p2, %p140_p1 }
   0xb   :  { %p143_p4 = pnand %p142_p3, %p136_p0 }
  0xc5   :  { %v131_v3 = vpop.f32.mrf.mxu0 }
  0xc6   :  { %v102_v4 = vmax.f32 %v131_v3, 0.0 }
  0xc7   :  { %v92_v5 = vpop.f32.mrf.mxu0 }
  0xc8   :  { %104 = vst [vmem:[#allocation2 + $0x8] sm:$0xff] %v102_v4  ;;  %v101_v6 = vmax.f32 %v92_v5, 0.0 }
  0xca   :  { %103 = vst [vmem:[#allocation2] sm:$0xff] %v101_v6 }
  0xcb   :  { %146 = shalt.err (!%p143_p4)
}
  0xcc   :  { %s158_s0 = smov 128   ;;  %s159_s17 = smov 8  }
  0xcd   :  { %116 = dma.vmem_to_hbm [thread:$0]  %s111_s16, 256, %s189_s2, [#allocation3], %s158_s0, %s158_s0, %s159_s17  }
  0xce   :  { %155 = dma.done.wait [#allocation3], 256  }
  0xcf   :  { %156 = vsyncadd [#allocation3], 4294967040 }
  0xd0   :  { %120 = vsyncpa [#allocation3], 1 }

</bundles_post_ra>
